<compile_context>
chip_gen: v7x
topology: tpu7x:2x2x1
jax: 0.10.0
libtpu: 0.0.40
codegen_flags: <defaults>
</compile_context>

<pallas_src>
import jax
import jax.numpy as jnp
from jax.experimental import pallas as pl
from jax.experimental.pallas import tpu as pltpu

# Small, module-consistent sizes
B, S, H = 2, 8, 32          # batch, seq, hidden
T, O = 4, 8                 # num_tasks, per-task output dim (shared)
V = 50                      # vocab size for the synthetic backbone embedding
VP = 56                     # V padded to a multiple of 8 (sublane-aligned slab section)

OUT_W = 128                 # lane-dense packed output width (one full vreg of lanes)
_GATED0 = 0                 # slab layout: [gated (O) | all_flat (T*O) | routing (T) | pad]
_ALL0 = O
_ROUT0 = O + T * O

# ---- packed parameter slab layout: one [128, 32] f32 array, one DMA ----
FT0 = 0                     # fused_table = emb_table @ w1   rows [0, VP)   lanes [0, H)
HW0 = FT0 + VP              # head_w_flat [H, T*O]           rows [56, 88)
SEL0 = HW0 + H              # sel         [T*O, O]           rows [88, 120)
SEG0 = SEL0 + T * O         # seg_mat     [B, B*S]           rows [120, 122)
B1R = SEG0 + B              # b1          [1, H]             row  122
HBR = B1R + 1               # head_b_flat [1, T*O]           row  123
TCR = HBR + 1               # task-of-column constant        row  124
TRR = TCR + 1               # task-index constant [0..T-1]   row  125
SLAB_R, SLAB_W = 128, 32


# ----------------------------------------------------------------------------
# Fused kernel: embedding gather + (pre-folded) backbone dense + masked mean
# pool + oracle one-hot routing + all task heads + hard gating.
# ----------------------------------------------------------------------------
def fused_oracle_kernel(x_ref, p_ref, out_ref):
    bs = B * S

    # ---- packed runtime inputs: [B*S, 3] f32 (ids | mask | labels) ----
    x = x_ref[...]
    ids_i = x[:, 0:1].astype(jnp.int32)                              # [B*S, 1]
    mask = x[:, 1:2]                                                 # [B*S, 1]
    labels_f = x[0:B, 2:3]                                           # [B, 1]

    # ---- static (free) slices of the resident VMEM param slab ----
    fused_w = p_ref[FT0:FT0 + VP, :]                                 # [VP, H]
    head_w = p_ref[HW0:HW0 + H, :]                                   # [H, T*O]
    sel = p_ref[SEL0:SEL0 + T * O, 0:O]                              # [T*O, O]
    seg_mat = p_ref[SEG0:SEG0 + B, 0:bs]                             # [B, B*S]
    b1 = p_ref[B1R:B1R + 1, :]                                       # [1, H]
    head_b = p_ref[HBR:HBR + 1, :]                                   # [1, T*O]
    task_of_col = p_ref[TCR:TCR + 1, :]                              # [1, T*O]
    task_row = p_ref[TRR:TRR + 1, 0:T]                               # [1, T]

    # ---- mask segment-sum: depends only on inputs -> overlaps the main chain ----
    msum = jnp.dot(seg_mat, mask, preferred_element_type=jnp.float32)   # [B, 1]

    # ---- in-kernel embedding gather fused with the backbone dense:
    #      one-hot(ids) @ (emb_table @ w1) on the MXU, then tanh on the EUP ----
    vocab_iota = jax.lax.broadcasted_iota(jnp.int32, (bs, VP), 1)
    onehot = (vocab_iota == ids_i).astype(jnp.float32)               # [B*S, VP]
    hid = jnp.tanh(jnp.dot(onehot, fused_w,
                           preferred_element_type=jnp.float32) + b1)  # [B*S, H]

    # ---- masked mean pooling via block-diagonal segment-sum MXU dot ----
    pooled_sum = jnp.dot(seg_mat, hid * mask,
                         preferred_element_type=jnp.float32)         # [B, H]
    pooled = pooled_sum / jnp.maximum(msum, 1.0)                     # [B, H]

    # ---- oracle routing: one-hot(task_labels) via compare against
    #      pre-materialized constant rows (no in-kernel iota // div) ----
    routing = (task_row == labels_f).astype(jnp.float32)             # [B, T]
    routing_rep = (task_of_col == labels_f).astype(jnp.float32)      # [B, T*O]

    # ---- all task heads in one matmul: [B,H] @ [H,T*O] + [1,T*O] ----
    all_flat = (jnp.dot(pooled, head_w,
                        preferred_element_type=jnp.float32) + head_b)  # [B, T*O]

    # ---- hard routing: masked multiply + tiny selection matmul ----
    gated = jnp.dot(routing_rep * all_flat, sel,
                    preferred_element_type=jnp.float32)              # [B, O]

    # ---- single lane-dense (128-wide) unmasked store ----
    pad = jnp.zeros((B, OUT_W - (O + T * O + T)), jnp.float32)
    out_ref[...] = jnp.concatenate([gated, all_flat, routing, pad], axis=-1)


# ----------------------------------------------------------------------------
# Wrapper: OracleRoutingBaseline.forward
# ----------------------------------------------------------------------------
def oracle_routing_forward(params, input_ids, attention_mask, task_labels):
    # Pack ids / mask / labels into one small f32 array (small ints exact in f32).
    ids_f = input_ids.reshape(B * S, 1).astype(jnp.float32)
    mask_f = attention_mask.reshape(B * S, 1).astype(jnp.float32)
    lab_f = jnp.pad(task_labels.astype(jnp.float32), (0, B * S - B)).reshape(B * S, 1)
    x_packed = jnp.concatenate([ids_f, mask_f, lab_f], axis=-1)      # [B*S, 3]

    vmem = pl.BlockSpec(memory_space=pltpu.MemorySpace.VMEM)
    cost = pl.CostEstimate(
        flops=66_000,
        transcendentals=B * S * H,
        bytes_accessed=(x_packed.size + SLAB_R * SLAB_W + B * OUT_W) * 4,
    )
    slab = pl.pallas_call(
        fused_oracle_kernel,
        out_shape=jax.ShapeDtypeStruct((B, OUT_W), jnp.float32),
        in_specs=[vmem, vmem],
        out_specs=vmem,
        cost_estimate=cost,
    )(x_packed, params["slab"])

    gated = slab[:, _GATED0:_GATED0 + O]                 # [B, O]  hard-routed output
    all_flat = slab[:, _ALL0:_ALL0 + T * O]              # [B, T*O]
    routing_probs = slab[:, _ROUT0:_ROUT0 + T]           # [B, T]

    task_outputs = {
        "routed_output": gated,
        "per_task_outputs": all_flat.reshape(B, T, O),
    }
    return {"task_outputs": task_outputs, "routing_probs": routing_probs}


def init_params(key):
    k_emb, k_w1, k_b1, k_hw, k_hb = jax.random.split(key, 5)
    emb_table = jax.random.normal(k_emb, (V, H), jnp.float32) * 0.02
    w1 = jax.random.normal(k_w1, (H, H), jnp.float32) * (1.0 / jnp.sqrt(H))
    b1 = jax.random.normal(k_b1, (1, H), jnp.float32) * 0.01
    # per-task head weights [T, H, O] stored flat as [H, T*O]
    head_w = jax.random.normal(k_hw, (T, H, O), jnp.float32) * (1.0 / jnp.sqrt(H))
    head_b = jax.random.normal(k_hb, (T, O), jnp.float32) * 0.01
    head_w_flat = jnp.transpose(head_w, (1, 0, 2)).reshape(H, T * O)
    head_b_flat = head_b.reshape(1, T * O)

    # Fold the backbone dense into the embedding table (numerically a row
    # selection later, so identical to gather-then-dense).
    fused_table = emb_table @ w1                                      # [V, H]

    # Constant matrices pre-materialized so the kernel does no iota/div rebuilds.
    seg_mat = (jnp.arange(B * S) // S == jnp.arange(B)[:, None]).astype(jnp.float32)
    sel = (jnp.arange(T * O)[:, None] % O == jnp.arange(O)[None, :]).astype(jnp.float32)
    task_of_col = (jnp.arange(T * O) // O).astype(jnp.float32)
    task_row = jnp.arange(T, dtype=jnp.float32)

    slab = jnp.zeros((SLAB_R, SLAB_W), jnp.float32)
    slab = slab.at[FT0:FT0 + V, 0:H].set(fused_table)
    slab = slab.at[HW0:HW0 + H, 0:T * O].set(head_w_flat)
    slab = slab.at[SEL0:SEL0 + T * O, 0:O].set(sel)
    slab = slab.at[SEG0:SEG0 + B, 0:B * S].set(seg_mat)
    slab = slab.at[B1R, 0:H].set(b1[0])
    slab = slab.at[HBR, 0:T * O].set(head_b_flat[0])
    slab = slab.at[TCR, 0:T * O].set(task_of_col)
    slab = slab.at[TRR, 0:T].set(task_row)

    return {
        "slab": slab,
        # raw params kept only for the pure-JAX reference check below
        "emb_table": emb_table,
        "w1": w1,
        "b1": b1,
        "head_w_flat": head_w_flat,
        "head_b_flat": head_b_flat,
    }


if __name__ == "__main__":
    key = jax.random.PRNGKey(0)
    params = init_params(key)

    k_ids = jax.random.fold_in(key, 1)
    input_ids = jax.random.randint(k_ids, (B, S), 0, V, dtype=jnp.int32)
    attention_mask = jnp.array([[1] * S, [1] * 5 + [0] * (S - 5)], jnp.float32)
    task_labels = jnp.array([2, 0], jnp.int32)   # oracle ground-truth task labels

    out = oracle_routing_forward(params, input_ids, attention_mask, task_labels)
    jax.block_until_ready(out)

    # sanity: routing_probs is exactly one-hot(task_labels)
    expected_routing = jax.nn.one_hot(task_labels, T, dtype=jnp.float32)
    assert jnp.allclose(out["routing_probs"], expected_routing)

    # sanity: hard-routed output matches the labeled task's head output
    per_task = out["task_outputs"]["per_task_outputs"]
    sel_ref = per_task[jnp.arange(B), task_labels]
    assert jnp.allclose(out["task_outputs"]["routed_output"], sel_ref, atol=1e-5)

    # sanity: hidden / pooling path matches a pure-JAX reference
    emb_ref = jnp.take(params["emb_table"], input_ids, axis=0)
    hid_ref = jnp.tanh(emb_ref @ params["w1"] + params["b1"])
    msum = jnp.maximum(attention_mask.sum(axis=1, keepdims=True), 1.0)
    pooled_ref = (hid_ref * attention_mask[:, :, None]).sum(axis=1) / msum
    all_ref = pooled_ref @ params["head_w_flat"] + params["head_b_flat"]
    assert jnp.allclose(per_task.reshape(B, T * O), all_ref, atol=1e-4)

    print("KERNEL_OK")
</pallas_src>

<mosaic_0001>
module attributes {stable_mosaic.version = 11 : i64} {
  func.func @fused_oracle_kernel(%arg0: memref<16x3xf32, #tpu.memory_space<vmem>>, %arg1: memref<128x32xf32, #tpu.memory_space<vmem>>, %arg2: memref<2x128xf32, #tpu.memory_space<vmem>>) attributes {dimension_semantics = [], scalar_prefetch = 0 : i64, scratch_operands = 0 : i64, tpu.core_type = #tpu.core_type<tc>} {
    %c0 = arith.constant 0 : index
    %c0_0 = arith.constant 0 : index
    %0 = vector.load %arg0[%c0, %c0_0] : memref<16x3xf32, #tpu.memory_space<vmem>>, vector<16x3xf32>
    %1 = vector.extract_strided_slice %0 {offsets = [0, 0], sizes = [16, 1], strides = [1, 1]} : vector<16x3xf32> to vector<16x1xf32>
    %2 = arith.fptosi %1 : vector<16x1xf32> to vector<16x1xi32>
    %3 = vector.extract_strided_slice %0 {offsets = [0, 1], sizes = [16, 1], strides = [1, 1]} : vector<16x3xf32> to vector<16x1xf32>
    %4 = vector.extract_strided_slice %0 {offsets = [0, 2], sizes = [2, 1], strides = [1, 1]} : vector<16x3xf32> to vector<2x1xf32>
    %c0_1 = arith.constant 0 : index
    %c0_2 = arith.constant 0 : index
    %5 = vector.load %arg1[%c0_1, %c0_2] : memref<128x32xf32, #tpu.memory_space<vmem>>, vector<56x32xf32>
    %c56 = arith.constant 56 : index
    %c0_3 = arith.constant 0 : index
    %6 = vector.load %arg1[%c56, %c0_3] : memref<128x32xf32, #tpu.memory_space<vmem>>, vector<32x32xf32>
    %c88 = arith.constant 88 : index
    %c0_4 = arith.constant 0 : index
    %7 = vector.load %arg1[%c88, %c0_4] : memref<128x32xf32, #tpu.memory_space<vmem>>, vector<32x8xf32>
    %c120 = arith.constant 120 : index
    %c0_5 = arith.constant 0 : index
    %8 = vector.load %arg1[%c120, %c0_5] : memref<128x32xf32, #tpu.memory_space<vmem>>, vector<2x16xf32>
    %c122 = arith.constant 122 : index
    %c0_6 = arith.constant 0 : index
    %9 = vector.load %arg1[%c122, %c0_6] : memref<128x32xf32, #tpu.memory_space<vmem>>, vector<1x32xf32>
    %c123 = arith.constant 123 : index
    %c0_7 = arith.constant 0 : index
    %10 = vector.load %arg1[%c123, %c0_7] : memref<128x32xf32, #tpu.memory_space<vmem>>, vector<1x32xf32>
    %c124 = arith.constant 124 : index
    %c0_8 = arith.constant 0 : index
    %11 = vector.load %arg1[%c124, %c0_8] : memref<128x32xf32, #tpu.memory_space<vmem>>, vector<1x32xf32>
    %c125 = arith.constant 125 : index
    %c0_9 = arith.constant 0 : index
    %12 = vector.load %arg1[%c125, %c0_9] : memref<128x32xf32, #tpu.memory_space<vmem>>, vector<1x4xf32>
    %cst = arith.constant dense<0.000000e+00> : vector<2x1xf32>
    %13 = tpu.matmul %8, %3, %cst {dimension_numbers = #tpu.dot_dimension_numbers<[1], [0], [0], [1], [0, 0, 1, 1], [], []>} : vector<2x16xf32>, vector<16x1xf32>, vector<2x1xf32> -> vector<2x1xf32>
    %14 = tpu.iota {dimensions = array<i32: 1>} : vector<16x56xi32>
    %15 = vector.broadcast %2 : vector<16x1xi32> to vector<16x56xi32>
    %16 = arith.cmpi eq, %14, %15 : vector<16x56xi32>
    %17 = arith.extui %16 : vector<16x56xi1> to vector<16x56xi32>
    %18 = arith.sitofp %17 : vector<16x56xi32> to vector<16x56xf32>
    %cst_10 = arith.constant dense<0.000000e+00> : vector<16x32xf32>
    %19 = tpu.matmul %18, %5, %cst_10 {dimension_numbers = #tpu.dot_dimension_numbers<[1], [0], [0], [1], [0, 0, 1, 1], [], []>} : vector<16x56xf32>, vector<56x32xf32>, vector<16x32xf32> -> vector<16x32xf32>
    %20 = vector.broadcast %9 : vector<1x32xf32> to vector<16x32xf32>
    %21 = arith.addf %19, %20 : vector<16x32xf32>
    %22 = math.tanh %21 : vector<16x32xf32>
    %23 = vector.broadcast %3 : vector<16x1xf32> to vector<16x32xf32>
    %24 = arith.mulf %22, %23 : vector<16x32xf32>
    %cst_11 = arith.constant dense<0.000000e+00> : vector<2x32xf32>
    %25 = tpu.matmul %8, %24, %cst_11 {dimension_numbers = #tpu.dot_dimension_numbers<[1], [0], [0], [1], [0, 0, 1, 1], [], []>} : vector<2x16xf32>, vector<16x32xf32>, vector<2x32xf32> -> vector<2x32xf32>
    %cst_12 = arith.constant 1.000000e+00 : f32
    %26 = vector.broadcast %cst_12 : f32 to vector<2x1xf32>
    %27 = arith.maximumf %13, %26 : vector<2x1xf32>
    %28 = vector.broadcast %27 : vector<2x1xf32> to vector<2x32xf32>
    %29 = arith.divf %25, %28 : vector<2x32xf32>
    %30 = vector.broadcast %12 : vector<1x4xf32> to vector<2x4xf32>
    %31 = vector.broadcast %4 : vector<2x1xf32> to vector<2x4xf32>
    %32 = arith.cmpf oeq, %30, %31 : vector<2x4xf32>
    %33 = arith.extui %32 : vector<2x4xi1> to vector<2x4xi32>
    %34 = arith.sitofp %33 : vector<2x4xi32> to vector<2x4xf32>
    %35 = vector.broadcast %11 : vector<1x32xf32> to vector<2x32xf32>
    %36 = vector.broadcast %4 : vector<2x1xf32> to vector<2x32xf32>
    %37 = arith.cmpf oeq, %35, %36 : vector<2x32xf32>
    %38 = arith.extui %37 : vector<2x32xi1> to vector<2x32xi32>
    %39 = arith.sitofp %38 : vector<2x32xi32> to vector<2x32xf32>
    %cst_13 = arith.constant dense<0.000000e+00> : vector<2x32xf32>
    %40 = tpu.matmul %29, %6, %cst_13 {dimension_numbers = #tpu.dot_dimension_numbers<[1], [0], [0], [1], [0, 0, 1, 1], [], []>} : vector<2x32xf32>, vector<32x32xf32>, vector<2x32xf32> -> vector<2x32xf32>
    %41 = vector.broadcast %10 : vector<1x32xf32> to vector<2x32xf32>
    %42 = arith.addf %40, %41 : vector<2x32xf32>
    %43 = arith.mulf %39, %42 : vector<2x32xf32>
    %cst_14 = arith.constant dense<0.000000e+00> : vector<2x8xf32>
    %44 = tpu.matmul %43, %7, %cst_14 {dimension_numbers = #tpu.dot_dimension_numbers<[1], [0], [0], [1], [0, 0, 1, 1], [], []>} : vector<2x32xf32>, vector<32x8xf32>, vector<2x8xf32> -> vector<2x8xf32>
    %cst_15 = arith.constant 0.000000e+00 : f32
    %45 = vector.broadcast %cst_15 : f32 to vector<2x84xf32>
    %46 = tpu.concatenate %44, %42, %34, %45 in 1 : vector<2x8xf32>, vector<2x32xf32>, vector<2x4xf32>, vector<2x84xf32> -> vector<2x128xf32>
    %c0_16 = arith.constant 0 : index
    %c0_17 = arith.constant 0 : index
    %47 = vector.load %arg2[%c0_16, %c0_17] : memref<2x128xf32, #tpu.memory_space<vmem>>, vector<2x128xf32>
    tpu.vector_store %arg2[%c0_16, %c0_17], %46 {strides = array<i32>} : memref<2x128xf32, #tpu.memory_space<vmem>>, vector<2x128xf32>,
    return
  }
}

</mosaic_0001>

<bundles_post_ra>
// kernel: tpu_custom_call.1
= control target key start
LH: loop header
LB: loop body
LE: loop exit
PB: predicated region body
PF: predicated region fallthrough
CT: control target
= control target key end

     0   :  { %v684_v3 = vmov 0   ;;  %s815_s0 = inlined_call_operand.vmem [shape: f32[16,3], index: 0, kind: input, shape index: {}]   ;;  %s816_s1 = inlined_call_operand.vmem [shape: f32[128,32], index: 1, kind: input, shape index: {}]   ;;  %s817_s2 = inlined_call_operand.hbm [shape: f32[2,128], index: 2, kind: output, shape index: {}]  }
   0x1   :  { %v712_v0 = vld [vmem:[%s815_s0] sm:$0xff]  ;;  %v13_v1 = vld [vmem:[%s815_s0 + $0x8] sm:$0xff]  ;;  %643 = vset.pattern.permute.xlu0 %v684_v3  ;;  %v18_v8 = vld [vmem:[%s816_s1 + $0x10] sm:$0xff] }
   0x2   :  { %v16_v2 = vld [vmem:[%s816_s1] sm:$0xff]  ;;  %v629_v4 = vtrunc.f32 %v712_v0  ;;  %v631_v5 = vtrunc.f32 %v13_v1  ;;  %v644_v6 = vpack.i.bf16 %v13_v1, %v712_v0  ;;  %v17_v7 = vld [vmem:[%s816_s1 + $0x8] sm:$0xff]  ;;  %v19_v9 = vld [vmem:[%s816_s1 + $0x18] sm:$0xff] }
   0x3   :  { %v602_v10 = vpack.c.bf16 %v17_v7, %v16_v2  ;;  %v606_v11 = vpack.c.bf16 %v19_v9, %v18_v8 }
   0x4   :  { %7 = vsyncpa [#allocation3], 0  ;;  %v630_v12 = vcvt.f32.s32 %v629_v4  ;;  %s685_s20 = smov 127   ;;  %v20_v13 = vld [vmem:[%s816_s1 + $0x20] sm:$0xff]  ;;  %v21_v14 = vld [vmem:[%s816_s1 + $0x28] sm:$0xff]  ;;  %v632_v15 = vcvt.f32.s32 %v631_v5  ;;  %v686_v18 = vmov 0.0|0.0   ;;  %v118_v26 = vlaneseq }
   0x5   :  { %645 = vrot.lane.b32.xlu1 %v644_v6, %s685_s20  ;;  %603 = vmatprep.subr.bf16.mxu1 %v602_v10  ;;  %v610_v16 = vpack.c.bf16 %v21_v14, %v20_v13  ;;  %v22_v17 = vld [vmem:[%s816_s1 + $0x30] sm:$0xff]  ;;  %vm687_vm0 = vmmov 0   ;;  %v688_v19 = vmov 0.0   ;;  %v689_v20 = vmov 1   ;;  %v31_v25 = vld [vmem:[%s816_s1 + $0x78] sm:$0x3] }
   0x6   :  { %121 = vperm.xlu0 %643, %v630_v12   ;;  %605 = vmatpush3.bf16.msra.mxu1 %v602_v10  ;;  %vm44_vm1 = vcmask 130048   ;;  %v119_v27 = vand.u32 127, %v118_v26  ;;  %vm136_vm2 = vcmask 457728   ;;  %v510_v35 = vld [vmem:[%s816_s1 + $0x7a] ss:$0 sm:$0xff]  ;;  %v24_v47 = vld [vmem:[%s816_s1 + $0x40] sm:$0xff] }
   0x7   :  { %607 = vmatprep.subr.bf16.mxu1 %v606_v11  ;;  %599 = vmatprep.subr.bf16.mxu0 %v686_v18  ;;  %v23_v46 = vld [vmem:[%s816_s1 + $0x38] sm:$0xff]  ;;  %v25_v50 = vld [vmem:[%s816_s1 + $0x48] sm:$0xff]  ;;  %v26_v51 = vld [vmem:[%s816_s1 + $0x50] sm:$0xff]  ;;  %v690_v55 = vmov 2   ;;  %vm330_vm5 = vcmask 261120   ;;  %s691_s20 = smov 40  }
   0x8   :  { %550 = vmatprep.mubr.msk.f32.mxu0 %vm687_vm0, %v688_v19  ;;  %649 = vset.pattern.permute.xlu1 %v689_v20  ;;  %v618_v49 = vpack.c.bf16 %v24_v47, %v23_v46  ;;  %v621_v52 = vpack.c.bf16 %v26_v51, %v25_v50  ;;  %v27_v53 = vld [vmem:[%s816_s1 + $0x58] sm:$0xff]  ;;  %v28_v54 = vld [vmem:[%s816_s1 + $0x60] sm:$0xff]  ;;  %s692_s25 = smov 8   ;;  %vm486_vm8 = vcmask 64512   ;;  %vm488_vm9 = vcmask 326656   ;;  %s693_s26 = smov [#allocation2]  }
   0x9   :  { %221 = vperm.xlu1 %649, %v712_v0   ;;  %v624_v56 = vpack.c.bf16 %v28_v54, %v27_v53  ;;  %v514_v62 = vld [vmem:[%s816_s1 + $0x7d] ss:$0 sm:$0xff]  ;;  %v516_v4 = vld [vmem:[%s816_s1 + $0x7c] ss:$0 sm:$0xff]  ;;  %v518_v5 = vld [vmem:[%s816_s1 + $0x7b] ss:$0 sm:$0xff] }
   0xa   :  { %124 = vperm.xlu0 %643, %v632_v15   ;;  %609 = vmatpush3.bf16.msra.mxu1 %v606_v11  ;;  %s499_s27 = sshll.u32 %s693_s26, 4  ;;  %vm490_vm10 = vcmask 359424   ;;  %s500_s27 = int_to_ptr.vmem [resolvable:$true] %s499_s27 }
   0xb   :  { %611 = vmatprep.subr.bf16.mxu1 %v610_v16  ;;  %p665_p1 = scmp.lt.s32.totalorder %s500_s27, %s500_s27 }
   0xd   :  { %651 = vset.pattern.permute.xlu1 %v684_v3 }
   0xe   :  { %613 = vmatpush3.bf16.msra.mxu1 %v610_v16  ;;  %650 = vset.pattern.permute.xlu0 %v689_v20 }
   0xf   :  { %565 = vmatprep.subr.mxu1 %v22_v17  ;;  %225 = vperm.xlu0 %650, %v13_v1   ;;  %v30_v1 = vld [vmem:[%s816_s1 + $0x70] sm:$0xff] }
  0x12   :  { %566 = vmatpush3.msra.mxu1 %v22_v17 }
  0x13   :  { %623 = vmatprep.subr.bf16.mxu1 %v686_v18  ;;  %653 = vset.pattern.permute.xlu0 %v690_v55 }
  0x77   :  { %v646_v21 = vpop.permute.xlu1 %645 }
  0x78   :  { %v648_v22 = vunpack.i.h.bf16 %v646_v21  ;;  %v647_v23 = vunpack.i.l.bf16 %v646_v21 }
  0x7a   :  { %v600_v24 = vpack.c.bf16 %v648_v22, %v647_v23 }
  0x7c   :  { %601 = vmatpush3.bf16.msra.mxu0 %v600_v24 }
  0x7d   :  { %614 = vmatprep.subr.bf16.mxu0 %v686_v18 }
  0x7f   :  { %551 = vmatmul.mubr.msk.f32.vlgmr.msra.gmra.mrb[0].mxu0 %vm44_vm1, %v31_v25 }
  0x80   :  { %574 = vmatprep.mubr.msk.f32.mxu0 %vm687_vm0, %v688_v19 }
  0x85   :  { %v122_v28 = vpop.permute.xlu0 %121 }
  0x86   :  { %vm126_vm3 = vcmp.eq.s32.totalorder %v119_v27, %v122_v28 }
  0x87   :  { %v508_v29 = vsel %vm126_vm3, 1.0, %v688_v19 }
  0x88   :  { %567 = vmatprep.mubr.msk.f32.mxu1 %vm136_vm2, %v508_v29  ;;  %v222_v41 = vpop.permute.xlu1 %221 }
  0x89   :  { %v125_v30 = vpop.permute.xlu0 %124 }
  0x8a   :  { %vm127_vm4 = vcmp.eq.s32.totalorder %v119_v27, %v125_v30 }
  0x8b   :  { %v509_v31 = vsel %vm127_vm4, 1.0, %v688_v19 }
  0x8c   :  { %568 = vmatmul.mubr.msk.f32.vlgmr.msra.gmra.mrb[0].mxu1 %vm136_vm2, %v509_v31 }
  0x8d   :  { %596 = vmatprep.mubr.msk.f32.mxu1 %vm687_vm0, %v688_v19  ;;  %625 = vmatpush3.bf16.msra.mxu1 %v624_v56 }
  0x8e   :  { %v226_v40 = vpop.permute.xlu0 %225  ;;  %626 = vmatprep.subr.bf16.mxu1 %v686_v18 }
 0x152   :  { %v114_v32 = vpop.f32.mrb[0].mxu0 }
 0x153   :  { %v300_v33 = vmax.f32 %v114_v32, 1.0  ;;  %v552_v34 = vpop.f32.mrb[1].mxu0 }
 0x155   :  { %303 = vperm.xlu1 %651, %v300_v33  }
 0x159   :  { %652 = vset.pattern.permute.xlu1 %v690_v55 }
 0x15a   :  { %313 = vperm.xlu1 %652, %v712_v0   ;;  %v29_v0 = vld [vmem:[%s816_s1 + $0x68] sm:$0xff]  ;;  %s660_s1 = scalar_lea.vmem %s500_s27, 32 }
 0x15b   :  { %v627_v2 = vpack.c.bf16 %v30_v1, %v29_v0  ;;  %p661_p0 = scmp.ne.s32.totalorder %s500_s27, %s660_s1  ;;  %p666_p2 = scmp.lt.s32.totalorder %s660_s1, %s660_s1 }
 0x15d   :  { %628 = vmatpush3.bf16.msra.mxu1 %v627_v2  ;;  %p667_p3 = por %p666_p2, %p665_p1 }
 0x15f   :  { %v569_v36 = vpop.f32.mrb[0].mxu1  ;;  %p668_p4 = pnand %p667_p3, %p661_p0 }
 0x160   :  { %v215_v37 = vadd.f32 %v569_v36, %v510_v35  ;;  %v209_v38 = vpop.f32.mrb[1].mxu1 }
 0x161   :  { %v210_v39 = vadd.f32 %v510_v35, %v209_v38 }
 0x162   :  { %654 = vtanh.f32 %v215_v37 }
 0x163   :  { %656 = vtanh.f32 %v210_v39 }
 0x16c   :  { %v655_v42 = vpop.eup %654 }
 0x16d   :  { %v657_v43 = vpop.eup %656  ;;  %v229_v44 = vmul.f32 %v655_v42, %v226_v40 }
 0x16e   :  { %v228_v45 = vmul.f32 %v657_v43, %v222_v41 }
 0x170   :  { %v615_v48 = vpack.c.bf16 %v229_v44, %v228_v45 }
 0x172   :  { %616 = vmatpush3.bf16.msra.mxu0 %v615_v48 }
 0x173   :  { %617 = vmatprep.subr.bf16.mxu0 %v686_v18 }
 0x175   :  { %575 = vmatmul.mubr.msk.f32.vlgmr.msra.gmra.mrb[2].mxu0 %vm44_vm1, %v31_v25 }
 0x176   :  { %619 = vmatpush3.bf16.msra.mxu0 %v618_v49  ;;  %585 = vmatprep.mubr.msk.f32.mxu0 %vm687_vm0, %v688_v19 }
 0x177   :  { %620 = vmatprep.subr.bf16.mxu0 %v686_v18 }
 0x17a   :  { %622 = vmatpush3.bf16.msra.mxu0 %v621_v52 }
 0x1d4   :  { %v304_v57 = vpop.permute.xlu1 %303 }
 0x1d5   :  { %658 = vrcp.f32 %v304_v57 }
 0x1d9   :  { %v314_v63 = vpop.permute.xlu1 %313 }
 0x1da   :  { %vm316_vm6 = vcmp.eq.f32.partialorder %v514_v62, %v314_v63  ;;  %vm323_vm7 = vcmp.eq.f32.partialorder %v516_v4, %v314_v63 }
 0x1db   :  { %v515_v3 = vsel %vm316_vm6, 1.0, %v688_v19  ;;  %v517_v6 = vsel %vm323_vm7, 1.0, %v688_v19 }
 0x1dc   :  { %483 = vrot.lane.b32.xlu1 %v515_v3, %s691_s20 }
 0x1df   :  { %v659_v58 = vpop.eup %658 }
 0x248   :  { %v296_v59 = vpop.f32.mrb[2].mxu0 }
 0x249   :  { %v307_v60 = vmul.f32 %v659_v58, %v296_v59  ;;  %v576_v61 = vpop.f32.mrb[3].mxu0 }
 0x24b   :  { %586 = vmatmul.mubr.msk.f32.vlgmr.msra.gmra.mrb[4].mxu0 %vm330_vm5, %v307_v60 }
 0x24e   :  { %v484_v13 = vpop.permute.xlu1 %483 }
 0x31e   :  { %v400_v7 = vpop.f32.mrb[4].mxu0 }
 0x31f   :  { %v401_v8 = vadd.f32 %v518_v5, %v400_v7  ;;  %v587_v9 = vpop.f32.mrb[5].mxu0 }
 0x321   :  { %v404_v10 = vmul.f32 %v517_v6, %v401_v8  ;;  %479 = vrot.lane.b32.xlu0 %v401_v8, %s692_s25 }
 0x323   :  { %597 = vmatmul.mubr.msk.f32.vlgmr.msra.gmra.mrb[2].mxu1 %vm330_vm5, %v404_v10 }
 0x393   :  { %v480_v11 = vpop.permute.xlu0 %479 }
 0x3f6   :  { %v474_v12 = vpop.f32.mrb[2].mxu1 }
 0x3f7   :  { %v487_v14 = vsel %vm486_vm8, %v474_v12, %v480_v11  ;;  %v598_v15 = vpop.f32.mrb[3].mxu1 }
 0x3f8   :  { %v489_v16 = vsel %vm488_vm9, %v487_v14, %v484_v13 }
 0x3f9   :  { %v491_v17 = vsel %vm490_vm10, %v489_v16, 0.0 }
 0x3fa   :  { %492 = vst [vmem:[#allocation2] sm:$0x3] %v491_v17 }
 0x3fb   :  { %671 = shalt.err (!%p668_p4)
}
 0x3fc   :  { %s672_s30 = scalar_lea.hbm %s817_s2, 32 }
 0x3fd   :  { %p673_p5 = scmp.ne.s32.totalorder %s817_s2, %s672_s30  ;;  %p676_p6 = scmp.lt.u32.totalorder %s672_s30, %s817_s2 }
 0x3ff   :  { %p678_p7 = pnand %p676_p6, %p673_p5 }
 0x401   :  { %681 = shalt.err (!%p678_p7)
}
 0x402   :  { %502 = dma.vmem_to_hbm [thread:$0]  %s500_s27, 32, %s817_s2, [#allocation3]  }
 0x403   :  { %682 = dma.done.wait [#allocation3], 32  }
 0x404   :  { %683 = vsyncadd [#allocation3], 4294967264 }
 0x405   :  { %506 = vsyncpa [#allocation3], 1 }

</bundles_post_ra>
